<compile_context>
chip_gen: v6e
topology: v6e:2x2x1
jax: 0.10.0
libtpu: 0.0.40
codegen_flags: <defaults>
</compile_context>

<pallas_src>
import jax
import jax.numpy as jnp
from jax.experimental import pallas as pl
from jax.experimental.pallas import tpu as pltpu

LANE = 128  # lane width: multi-tile batch tiles are multiples of this


def _round_up(x, m):
    return (x + m - 1) // m * m


def _choose_tile_b(batch, tile_b):
    """Pick the batch tile.

    Small batches -> a single full-array block (no alignment constraint).
    Larger batches -> a lane-aligned (multiple-of-128) tile, preferring an even
    number of tiles so v7x's two TensorCores get balanced work.
    """
    if batch <= tile_b:
        return batch
    n_tiles = pl.cdiv(batch, tile_b)
    if n_tiles % 2:
        n_tiles += 1
    return max(LANE, _round_up(pl.cdiv(batch, n_tiles), LANE))


def _mlp_kernel(x_ref,
                w1_ref, b1_ref,
                w2_ref, b2_ref,
                w3_ref, b3_ref,
                w4t_ref, b4t_ref,
                o_ref):
    # Layers 1-3: f32 MXU matmul + bias + ReLU (VPU), batch on the sublane axis.
    h = jnp.dot(x_ref[...], w1_ref[...], preferred_element_type=jnp.float32)
    h = jnp.maximum(h + b1_ref[...], 0.0)
    h = jnp.dot(h, w2_ref[...], preferred_element_type=jnp.float32)
    h = jnp.maximum(h + b2_ref[...], 0.0)
    h = jnp.dot(h, w3_ref[...], preferred_element_type=jnp.float32)
    h = jnp.maximum(h + b3_ref[...], 0.0)
    # Layer 4 computed directly in transposed form (output_dim, tile_b):
    # contract w4t (out, hidden3) with h (tile_b, hidden3) over the hidden axis
    # (standard NT / "trans_b" MXU pattern), so the store is lane-dense along
    # the batch and needs no 4->128 lane padding.
    logits_t = jax.lax.dot_general(
        w4t_ref[...], h,
        dimension_numbers=(((1,), (1,)), ((), ())),
        preferred_element_type=jnp.float32)
    # Sigmoid lowers to the EUP logistic path; bias broadcast along lanes.
    o_ref[...] = jax.nn.sigmoid(logits_t + b4t_ref[...]).astype(o_ref.dtype)


def prepare_params(params):
    """One-time param prep for the kernel (do NOT call per forward).

    Weights stay f32 stored as (in, out); the last layer is pre-transposed so
    the kernel can emit a transposed, lane-dense output.
    """
    f32 = jnp.float32
    return {
        "w1": params["w1"].astype(f32),
        "b1": params["b1"].astype(f32).reshape(1, -1),
        "w2": params["w2"].astype(f32),
        "b2": params["b2"].astype(f32).reshape(1, -1),
        "w3": params["w3"].astype(f32),
        "b3": params["b3"].astype(f32).reshape(1, -1),
        "w4t": params["w4"].astype(f32).T,               # (output_dim, hidden3)
        "b4t": params["b4"].astype(f32).reshape(-1, 1),  # (output_dim, 1)
    }


def popularity_mlp_forward(x, prepared, *, tile_b=1024):
    """x: (batch, input_dim) f32. prepared: output of prepare_params()."""
    if x.dtype != jnp.float32:
        x = x.astype(jnp.float32)
    batch, input_dim = x.shape
    output_dim = prepared["w4t"].shape[0]

    tile_b = _choose_tile_b(batch, tile_b)
    grid = (pl.cdiv(batch, tile_b),)

    # Weights & biases: constant index_map -> DMA'd once, VMEM-resident across
    # all grid steps.
    def resident(arr):
        return pl.BlockSpec(arr.shape, lambda i: (0, 0))

    in_specs = [
        pl.BlockSpec((tile_b, input_dim), lambda i: (i, 0)),   # x tile (f32)
        resident(prepared["w1"]), resident(prepared["b1"]),
        resident(prepared["w2"]), resident(prepared["b2"]),
        resident(prepared["w3"]), resident(prepared["b3"]),
        resident(prepared["w4t"]), resident(prepared["b4t"]),
    ]
    # Transposed output: (output_dim, batch) with the batch on the lane axis.
    out_spec = pl.BlockSpec((output_dim, tile_b), lambda i: (0, i))

    out_t = pl.pallas_call(
        _mlp_kernel,
        out_shape=jax.ShapeDtypeStruct((output_dim, batch), jnp.float32),
        grid=grid,
        in_specs=in_specs,
        out_specs=out_spec,
        compiler_params=pltpu.CompilerParams(
            dimension_semantics=("parallel",),   # megacore sharding on v7x
        ),
    )(x, prepared["w1"], prepared["b1"],
      prepared["w2"], prepared["b2"],
      prepared["w3"], prepared["b3"],
      prepared["w4t"], prepared["b4t"])

    return out_t.T   # (batch, output_dim); tiny transpose in the wrapper


def init_params(key, input_dim, output_dim, hidden1, hidden2, hidden3):
    """Deterministic init matching nn.Linear shapes (weights stored as (in, out))."""
    dims = [(input_dim, hidden1), (hidden1, hidden2),
            (hidden2, hidden3), (hidden3, output_dim)]
    params = {}
    keys = jax.random.split(key, 2 * len(dims))
    for i, (fan_in, fan_out) in enumerate(dims):
        bound = 1.0 / jnp.sqrt(fan_in)
        w = jax.random.uniform(keys[2 * i], (fan_in, fan_out),
                               minval=-bound, maxval=bound, dtype=jnp.float32)
        b = jax.random.uniform(keys[2 * i + 1], (1, fan_out),
                               minval=-bound, maxval=bound, dtype=jnp.float32)
        params[f"w{i + 1}"] = w
        params[f"b{i + 1}"] = b
    return params


def reference_forward(x, params):
    """Pure-JAX f32 reference matching the PyTorch module."""
    hi = jax.lax.Precision.HIGHEST
    h = jnp.maximum(jnp.dot(x, params["w1"], precision=hi) + params["b1"], 0.0)
    h = jnp.maximum(jnp.dot(h, params["w2"], precision=hi) + params["b2"], 0.0)
    h = jnp.maximum(jnp.dot(h, params["w3"], precision=hi) + params["b3"], 0.0)
    return jax.nn.sigmoid(jnp.dot(h, params["w4"], precision=hi) + params["b4"])


if __name__ == "__main__":
    input_dim, output_dim = 16, 4
    hidden1 = hidden2 = hidden3 = 32

    key = jax.random.PRNGKey(0)
    k_x1, k_x2, k_p = jax.random.split(key, 3)
    params = init_params(k_p, input_dim, output_dim, hidden1, hidden2, hidden3)
    prepared = prepare_params(params)

    # Case 1: small batch -> single full-array block (no alignment constraints).
    x1 = jax.random.normal(k_x1, (10, input_dim), dtype=jnp.float32)
    out1 = jax.block_until_ready(popularity_mlp_forward(x1, prepared))
    assert out1.shape == (10, output_dim)
    ref1 = reference_forward(x1, params)
    err1 = float(jnp.max(jnp.abs(out1 - ref1)))
    assert err1 < 5e-3, err1

    # Case 2: batch > tile -> tiled grid with a partial (masked) boundary block.
    x2 = jax.random.normal(k_x2, (300, input_dim), dtype=jnp.float32)
    out2 = jax.block_until_ready(popularity_mlp_forward(x2, prepared, tile_b=128))
    assert out2.shape == (300, output_dim)
    ref2 = reference_forward(x2, params)
    err2 = float(jnp.max(jnp.abs(out2 - ref2)))
    assert err2 < 5e-3, err2

    print("KERNEL_OK")
</pallas_src>

<mosaic_0001>
module attributes {stable_mosaic.version = 11 : i64} {
  func.func @_mlp_kernel(%arg0: i32, %arg1: memref<10x16xf32, #tpu.memory_space<vmem>>, %arg2: memref<16x32xf32, #tpu.memory_space<vmem>>, %arg3: memref<1x32xf32, #tpu.memory_space<vmem>>, %arg4: memref<32x32xf32, #tpu.memory_space<vmem>>, %arg5: memref<1x32xf32, #tpu.memory_space<vmem>>, %arg6: memref<32x32xf32, #tpu.memory_space<vmem>>, %arg7: memref<1x32xf32, #tpu.memory_space<vmem>>, %arg8: memref<4x32xf32, #tpu.memory_space<vmem>>, %arg9: memref<4x1xf32, #tpu.memory_space<vmem>>, %arg10: memref<4x10xf32, #tpu.memory_space<vmem>>) attributes {dimension_semantics = [#tpu.dimension_semantics<parallel>], iteration_bounds = array<i64: 1>, scalar_prefetch = 0 : i64, scratch_operands = 0 : i64, tpu.core_type = #tpu.core_type<tc>, window_params = [{transform_indices = @transform_0, window_bounds = array<i64: 10, 16>}, {pipeline_mode = #tpu.pipeline_mode<synchronous>, transform_indices = @transform_1, window_bounds = array<i64: 16, 32>}, {pipeline_mode = #tpu.pipeline_mode<synchronous>, transform_indices = @transform_2, window_bounds = array<i64: 1, 32>}, {pipeline_mode = #tpu.pipeline_mode<synchronous>, transform_indices = @transform_3, window_bounds = array<i64: 32, 32>}, {pipeline_mode = #tpu.pipeline_mode<synchronous>, transform_indices = @transform_4, window_bounds = array<i64: 1, 32>}, {pipeline_mode = #tpu.pipeline_mode<synchronous>, transform_indices = @transform_5, window_bounds = array<i64: 32, 32>}, {pipeline_mode = #tpu.pipeline_mode<synchronous>, transform_indices = @transform_6, window_bounds = array<i64: 1, 32>}, {pipeline_mode = #tpu.pipeline_mode<synchronous>, transform_indices = @transform_7, window_bounds = array<i64: 4, 32>}, {pipeline_mode = #tpu.pipeline_mode<synchronous>, transform_indices = @transform_8, window_bounds = array<i64: 4, 1>}, {transform_indices = @transform_9, window_bounds = array<i64: 4, 10>}]} {
    %c0 = arith.constant 0 : index
    %c0_0 = arith.constant 0 : index
    %0 = vector.load %arg1[%c0, %c0_0] : memref<10x16xf32, #tpu.memory_space<vmem>>, vector<10x16xf32>
    %c0_1 = arith.constant 0 : index
    %c0_2 = arith.constant 0 : index
    %1 = vector.load %arg2[%c0_1, %c0_2] : memref<16x32xf32, #tpu.memory_space<vmem>>, vector<16x32xf32>
    %cst = arith.constant dense<0.000000e+00> : vector<10x32xf32>
    %2 = tpu.matmul %0, %1, %cst {dimension_numbers = #tpu.dot_dimension_numbers<[1], [0], [0], [1], [0, 0, 1, 1], [], []>} : vector<10x16xf32>, vector<16x32xf32>, vector<10x32xf32> -> vector<10x32xf32>
    %c0_3 = arith.constant 0 : index
    %c0_4 = arith.constant 0 : index
    %3 = vector.load %arg3[%c0_3, %c0_4] : memref<1x32xf32, #tpu.memory_space<vmem>>, vector<1x32xf32>
    %4 = vector.broadcast %3 : vector<1x32xf32> to vector<10x32xf32>
    %5 = arith.addf %2, %4 : vector<10x32xf32>
    %cst_5 = arith.constant 0.000000e+00 : f32
    %6 = vector.broadcast %cst_5 : f32 to vector<10x32xf32>
    %7 = arith.maximumf %5, %6 : vector<10x32xf32>
    %c0_6 = arith.constant 0 : index
    %c0_7 = arith.constant 0 : index
    %8 = vector.load %arg4[%c0_6, %c0_7] : memref<32x32xf32, #tpu.memory_space<vmem>>, vector<32x32xf32>
    %cst_8 = arith.constant dense<0.000000e+00> : vector<10x32xf32>
    %9 = tpu.matmul %7, %8, %cst_8 {dimension_numbers = #tpu.dot_dimension_numbers<[1], [0], [0], [1], [0, 0, 1, 1], [], []>} : vector<10x32xf32>, vector<32x32xf32>, vector<10x32xf32> -> vector<10x32xf32>
    %c0_9 = arith.constant 0 : index
    %c0_10 = arith.constant 0 : index
    %10 = vector.load %arg5[%c0_9, %c0_10] : memref<1x32xf32, #tpu.memory_space<vmem>>, vector<1x32xf32>
    %11 = vector.broadcast %10 : vector<1x32xf32> to vector<10x32xf32>
    %12 = arith.addf %9, %11 : vector<10x32xf32>
    %cst_11 = arith.constant 0.000000e+00 : f32
    %13 = vector.broadcast %cst_11 : f32 to vector<10x32xf32>
    %14 = arith.maximumf %12, %13 : vector<10x32xf32>
    %c0_12 = arith.constant 0 : index
    %c0_13 = arith.constant 0 : index
    %15 = vector.load %arg6[%c0_12, %c0_13] : memref<32x32xf32, #tpu.memory_space<vmem>>, vector<32x32xf32>
    %cst_14 = arith.constant dense<0.000000e+00> : vector<10x32xf32>
    %16 = tpu.matmul %14, %15, %cst_14 {dimension_numbers = #tpu.dot_dimension_numbers<[1], [0], [0], [1], [0, 0, 1, 1], [], []>} : vector<10x32xf32>, vector<32x32xf32>, vector<10x32xf32> -> vector<10x32xf32>
    %c0_15 = arith.constant 0 : index
    %c0_16 = arith.constant 0 : index
    %17 = vector.load %arg7[%c0_15, %c0_16] : memref<1x32xf32, #tpu.memory_space<vmem>>, vector<1x32xf32>
    %18 = vector.broadcast %17 : vector<1x32xf32> to vector<10x32xf32>
    %19 = arith.addf %16, %18 : vector<10x32xf32>
    %cst_17 = arith.constant 0.000000e+00 : f32
    %20 = vector.broadcast %cst_17 : f32 to vector<10x32xf32>
    %21 = arith.maximumf %19, %20 : vector<10x32xf32>
    %c0_18 = arith.constant 0 : index
    %c0_19 = arith.constant 0 : index
    %22 = vector.load %arg8[%c0_18, %c0_19] : memref<4x32xf32, #tpu.memory_space<vmem>>, vector<4x32xf32>
    %cst_20 = arith.constant dense<0.000000e+00> : vector<4x10xf32>
    %23 = tpu.matmul %22, %21, %cst_20 {dimension_numbers = #tpu.dot_dimension_numbers<[1], [1], [0], [0], [0, 0, 1, 0], [], []>} : vector<4x32xf32>, vector<10x32xf32>, vector<4x10xf32> -> vector<4x10xf32>
    %c0_21 = arith.constant 0 : index
    %c0_22 = arith.constant 0 : index
    %24 = vector.load %arg9[%c0_21, %c0_22] : memref<4x1xf32, #tpu.memory_space<vmem>>, vector<4x1xf32>
    %25 = vector.broadcast %24 : vector<4x1xf32> to vector<4x10xf32>
    %26 = arith.addf %23, %25 : vector<4x10xf32>
    %27 = arith.negf %26 : vector<4x10xf32>
    %28 = math.exp %27 : vector<4x10xf32>
    %cst_23 = arith.constant 1.000000e+00 : f32
    %29 = vector.broadcast %cst_23 : f32 to vector<4x10xf32>
    %30 = arith.addf %29, %28 : vector<4x10xf32>
    %31 = arith.divf %29, %30 : vector<4x10xf32>
    %c0_24 = arith.constant 0 : index
    %c0_25 = arith.constant 0 : index
    %32 = vector.load %arg10[%c0_24, %c0_25] : memref<4x10xf32, #tpu.memory_space<vmem>>, vector<4x10xf32>
    tpu.vector_store %arg10[%c0_24, %c0_25], %31 {strides = array<i32>} : memref<4x10xf32, #tpu.memory_space<vmem>>, vector<4x10xf32>,
    return
  }
  func.func @transform_0(%arg0: i32) -> (i32, i32) {
    %c0_i32 = arith.constant 0 : i32
    %c0_i32_0 = arith.constant 0 : i32
    return %arg0, %c0_i32 : i32, i32
  }
  func.func @transform_1(%arg0: i32) -> (i32, i32) {
    %c0_i32 = arith.constant 0 : i32
    %c0_i32_0 = arith.constant 0 : i32
    %c0_i32_1 = arith.constant 0 : i32
    return %c0_i32, %c0_i32_0 : i32, i32
  }
  func.func @transform_2(%arg0: i32) -> (i32, i32) {
    %c0_i32 = arith.constant 0 : i32
    %c0_i32_0 = arith.constant 0 : i32
    %c0_i32_1 = arith.constant 0 : i32
    return %c0_i32, %c0_i32_0 : i32, i32
  }
  func.func @transform_3(%arg0: i32) -> (i32, i32) {
    %c0_i32 = arith.constant 0 : i32
    %c0_i32_0 = arith.constant 0 : i32
    %c0_i32_1 = arith.constant 0 : i32
    return %c0_i32, %c0_i32_0 : i32, i32
  }
  func.func @transform_4(%arg0: i32) -> (i32, i32) {
    %c0_i32 = arith.constant 0 : i32
    %c0_i32_0 = arith.constant 0 : i32
    %c0_i32_1 = arith.constant 0 : i32
    return %c0_i32, %c0_i32_0 : i32, i32
  }
  func.func @transform_5(%arg0: i32) -> (i32, i32) {
    %c0_i32 = arith.constant 0 : i32
    %c0_i32_0 = arith.constant 0 : i32
    %c0_i32_1 = arith.constant 0 : i32
    return %c0_i32, %c0_i32_0 : i32, i32
  }
  func.func @transform_6(%arg0: i32) -> (i32, i32) {
    %c0_i32 = arith.constant 0 : i32
    %c0_i32_0 = arith.constant 0 : i32
    %c0_i32_1 = arith.constant 0 : i32
    return %c0_i32, %c0_i32_0 : i32, i32
  }
  func.func @transform_7(%arg0: i32) -> (i32, i32) {
    %c0_i32 = arith.constant 0 : i32
    %c0_i32_0 = arith.constant 0 : i32
    %c0_i32_1 = arith.constant 0 : i32
    return %c0_i32, %c0_i32_0 : i32, i32
  }
  func.func @transform_8(%arg0: i32) -> (i32, i32) {
    %c0_i32 = arith.constant 0 : i32
    %c0_i32_0 = arith.constant 0 : i32
    %c0_i32_1 = arith.constant 0 : i32
    return %c0_i32, %c0_i32_0 : i32, i32
  }
  func.func @transform_9(%arg0: i32) -> (i32, i32) {
    %c0_i32 = arith.constant 0 : i32
    %c0_i32_0 = arith.constant 0 : i32
    return %c0_i32, %arg0 : i32, i32
  }
}

</mosaic_0001>

<bundles_post_ra>
// kernel: tpu_custom_call.1
= control target key start
LH: loop header
LB: loop body
LE: loop exit
PB: predicated region body
PF: predicated region fallthrough
CT: control target
= control target key end

     0   :  { %14 = vsyncpa [#allocation3], 0  ;;  %s783_s0 = inlined_call_operand.hbm [shape: f32[10,16], index: 0, kind: input, shape index: {}]   ;;  %s784_s1 = inlined_call_operand.hbm [shape: f32[16,32], index: 1, kind: input, shape index: {}]   ;;  %s785_s2 = inlined_call_operand.vmem [shape: f32[1,32], index: 2, kind: input, shape index: {}]   ;;  %s786_s3 = inlined_call_operand.hbm [shape: f32[32,32], index: 3, kind: input, shape index: {}]   ;;  %s787_s4 = inlined_call_operand.vmem [shape: f32[1,32], index: 4, kind: input, shape index: {}]   ;;  %s788_s5 = inlined_call_operand.hbm [shape: f32[32,32], index: 5, kind: input, shape index: {}]   ;;  %s789_s6 = inlined_call_operand.vmem [shape: f32[1,32], index: 6, kind: input, shape index: {}]   ;;  %s790_s7 = inlined_call_operand.vmem [shape: f32[4,32], index: 7, kind: input, shape index: {}]   ;;  %s791_s8 = inlined_call_operand.vmem [shape: f32[4,1], index: 8, kind: input, shape index: {}]   ;;  %s792_s9 = inlined_call_operand.hbm [shape: f32[4,10], index: 9, kind: output, shape index: {}]  }
   0x1   :  { %15 = vsyncpa [#allocation6], 0 }
   0x2   :  { %16 = vsyncpa [#allocation9], 0 }
   0x3   :  { %17 = vsyncpa [#allocation4], 0  ;;  %s674_s30 = smov [#allocation5]   ;;  %s675_s11 = smov [#allocation2]  }
   0x4   :  { %s35_s10 = sshll.u32 %s674_s30, 4  ;;  %s23_s12 = sshll.u32 %s675_s11, 4  ;;  %s36_s10 = int_to_ptr.vmem [resolvable:$true] %s35_s10  ;;  %s24_s12 = int_to_ptr.vmem [resolvable:$true] %s23_s12 }
   0x5   :  { %s574_s13 = scalar_lea.vmem %s36_s10, 256  ;;  %p579_p1 = scmp.lt.s32.totalorder %s36_s10, %s36_s10 }
   0x6   :  { %p575_p0 = scmp.ne.s32.totalorder %s36_s10, %s574_s13  ;;  %p580_p2 = scmp.lt.s32.totalorder %s574_s13, %s574_s13 }
   0x8   :  { %p581_p3 = por %p580_p2, %p579_p1 }
   0xa   :  { %p582_p4 = pnand %p581_p3, %p575_p0 }
   0xc   :  { %585 = shalt.err (!%p582_p4)
}
   0xd   :  { %s676_s14 = smov 128   ;;  %s677_s15 = smov 8  }
   0xe   :  { %41 = dma.hbm_to_vmem [thread:$0]  %s784_s1, 256, %s36_s10, [#allocation6], %s676_s14, %s676_s14, %s677_s15  }
   0xf   :  { %s594_s18 = scalar_lea.vmem %s24_s12, 256  ;;  %p599_p6 = scmp.lt.s32.totalorder %s24_s12, %s24_s12 }
  0x10   :  { %p595_p5 = scmp.ne.s32.totalorder %s24_s12, %s594_s18  ;;  %p600_p7 = scmp.lt.s32.totalorder %s594_s18, %s594_s18 }
  0x12   :  { %p601_p8 = por %p600_p7, %p599_p6 }
  0x14   :  { %p602_p9 = pnand %p601_p8, %p595_p5 }
  0x16   :  { %605 = shalt.err (!%p602_p9)
}
  0x17   :  { %29 = dma.hbm_to_vmem [thread:$0]  %s783_s0, 256, %s24_s12, [#allocation3], %s676_s14, %s676_s14, %s677_s15  }
  0x18   :  { %s678_s21 = smov [#allocation7]   ;;  %s679_s23 = smov [#allocation8]  }
  0x19   :  { %s49_s22 = sshll.u32 %s678_s21, 4  ;;  %s63_s24 = sshll.u32 %s679_s23, 4  ;;  %s50_s22 = int_to_ptr.vmem [resolvable:$true] %s49_s22  ;;  %s64_s24 = int_to_ptr.vmem [resolvable:$true] %s63_s24 }
  0x1a   :  { %s614_s1 = scalar_lea.vmem %s50_s22, 512  ;;  %p619_p11 = scmp.lt.s32.totalorder %s50_s22, %s50_s22 }
  0x1b   :  { %p615_p10 = scmp.ne.s32.totalorder %s50_s22, %s614_s1  ;;  %p620_p12 = scmp.lt.s32.totalorder %s614_s1, %s614_s1 }
  0x1d   :  { %p621_p13 = por %p620_p12, %p619_p11 }
  0x1f   :  { %p622_p0 = pnand %p621_p13, %p615_p10 }
  0x21   :  { %625 = shalt.err (!%p622_p0)
}
  0x22   :  { %55 = dma.hbm_to_vmem [thread:$0]  %s786_s3, 512, %s50_s22, [#allocation6], %s676_s14, %s676_s14, %s677_s15  }
  0x23   :  { %s634_s0 = scalar_lea.vmem %s64_s24, 512  ;;  %p639_p2 = scmp.lt.s32.totalorder %s64_s24, %s64_s24 }
  0x24   :  { %p635_p1 = scmp.ne.s32.totalorder %s64_s24, %s634_s0  ;;  %p640_p3 = scmp.lt.s32.totalorder %s634_s0, %s634_s0 }
  0x26   :  { %p641_p4 = por %p640_p3, %p639_p2 }
  0x28   :  { %p642_p5 = pnand %p641_p4, %p635_p1 }
  0x2a   :  { %645 = shalt.err (!%p642_p5)
}
  0x2b   :  { %69 = dma.hbm_to_vmem [thread:$0]  %s788_s5, 512, %s64_s24, [#allocation9], %s676_s14, %s676_s14, %s677_s15  }
  0x2c   :  { %666 = dma.done.wait [#allocation3], 256  }
  0x2d   :  { %667 = vsyncadd [#allocation3], 4294967040 }
  0x2e   :  { %668 = dma.done.wait [#allocation6], 768  }
  0x2f   :  { %669 = vsyncadd [#allocation6], 4294966528 }
  0x30   :  { %670 = dma.done.wait [#allocation9], 512  }
  0x31   :  { %671 = vsyncadd [#allocation9], 4294966784  ;;  %vm99_vm0 = vcmask 130048   ;;  %v91_v0 = vld [vmem:[#allocation5 + $0x8] sm:$0xff]  ;;  %v90_v1 = vld [vmem:[#allocation5] sm:$0xff]  ;;  %vm194_vm1 = vcmask 261120  }
  0x32   :  { %v88_v2 = vld [vmem:[#allocation2] sm:$0xff]  ;;  %515 = vmatprep.subr.mxu0 %v91_v0  ;;  %v89_v3 = vld [vmem:[#allocation2 + $0x8] sm:$0x3]  ;;  %v186_v4 = vld [vmem:[#allocation7 + $0x18] sm:$0xff]  ;;  %v680_v26 = vmov 0.0   ;;  %vm681_vm2 = vmmov 0  }
  0x33   :  { %519 = vmatprep.mubr.msk.f32.mxu0 %vm99_vm0, %v88_v2  ;;  %516 = vmatpush3.msra.mxu0 %v91_v0  ;;  %v185_v5 = vld [vmem:[#allocation7 + $0x10] sm:$0xff]  ;;  %v184_v6 = vld [vmem:[#allocation7 + $0x8] sm:$0xff]  ;;  %v183_v7 = vld [vmem:[#allocation7] sm:$0xff]  ;;  %v682_v28 = vmov 0   ;;  %vm464_vm3 = vcmask 76800  }
  0x34   :  { %517 = vmatprep.subr.mxu0 %v90_v1  ;;  %522 = vmatprep.subr.mxu1 %v186_v4  ;;  %v483_v8 = vld [vmem:[%s785_s2] ss:$0 sm:$0xff]  ;;  %v281_v15 = vld [vmem:[#allocation8 + $0x18] sm:$0xff]  ;;  %v280_v16 = vld [vmem:[#allocation8 + $0x10] sm:$0xff] }
  0x35   :  { %518 = vmatpush3.msra.mxu0 %v90_v1  ;;  %523 = vmatpush3.msra.mxu1 %v186_v4  ;;  %v279_v17 = vld [vmem:[#allocation8 + $0x8] sm:$0xff]  ;;  %v278_v18 = vld [vmem:[#allocation8] sm:$0xff] }
  0x36   :  { %520 = vmatmul.mubr.msk.f32.vlgmr.msra.gmra.mxu0 %vm99_vm0, %v89_v3  ;;  %524 = vmatprep.subr.mxu1 %v185_v5  ;;  %v486_v19 = vld [vmem:[%s787_s4] ss:$0 sm:$0xff] }
  0x37   :  { %525 = vmatpush3.msra.mxu1 %v185_v5  ;;  %533 = vmatprep.subr.mxu0 %v281_v15  ;;  %v373_v27 = vld [vmem:[%s791_s8] sm:$0xf] }
  0x38   :  { %526 = vmatprep.subr.mxu1 %v184_v6  ;;  %534 = vmatpush3.msra.mxu0 %v281_v15  ;;  %v489_v29 = vld [vmem:[%s789_s6] ss:$0 sm:$0xff]  ;;  %s683_s6 = smov [#allocation10]  }
  0x39   :  { %527 = vmatpush3.msra.mxu1 %v184_v6  ;;  %535 = vmatprep.subr.mxu0 %v280_v16  ;;  %v372_v36 = vld [vmem:[%s790_s7] sm:$0xf]  ;;  %s472_s13 = sshll.u32 %s683_s6, 4  ;;  %s473_s13 = int_to_ptr.vmem [resolvable:$true] %s472_s13 }
  0x3a   :  { %528 = vmatprep.subr.mxu1 %v183_v7  ;;  %536 = vmatpush3.msra.mxu0 %v280_v16  ;;  %s646_s14 = scalar_lea.vmem %s473_s13, 64  ;;  %p651_p7 = scmp.lt.s32.totalorder %s473_s13, %s473_s13 }
  0x3b   :  { %529 = vmatpush3.msra.mxu1 %v183_v7  ;;  %537 = vmatprep.subr.mxu0 %v279_v17  ;;  %p647_p6 = scmp.ne.s32.totalorder %s473_s13, %s646_s14  ;;  %p652_p8 = scmp.lt.s32.totalorder %s646_s14, %s646_s14 }
  0x3c   :  { %538 = vmatpush3.msra.mxu0 %v279_v17  ;;  %544 = vmatprep.subr.mxu1 %v680_v26 }
  0x3d   :  { %539 = vmatprep.subr.mxu0 %v278_v18  ;;  %561 = vset.pattern.permute.xlu0 %v682_v28  ;;  %p653_p9 = por %p652_p8, %p651_p7 }
  0x3e   :  { %540 = vmatpush3.msra.mxu0 %v278_v18  ;;  %376 = vperm.xlu0 %561, %v373_v27  }
  0x3f   :  { %p654_p10 = pnand %p653_p9, %p647_p6 }
  0xb9   :  { %v377_v37 = vpop.permute.xlu0 %376 }
  0xf6   :  { %v521_v9 = vpop.f32.mrf.mxu0 }
  0xf7   :  { %v178_v10 = vadd.f32 %v521_v9, %v483_v8 }
  0xf8   :  { %v172_v11 = vpop.f32.mrf.mxu0 }
  0xf9   :  { %v173_v12 = vadd.f32 %v483_v8, %v172_v11  ;;  %v182_v14 = vmax.f32 %v178_v10, 0.0 }
  0xfb   :  { %v181_v13 = vmax.f32 %v173_v12, 0.0 }
  0xfd   :  { %530 = vmatprep.mubr.msk.f32.mxu1 %vm194_vm1, %v181_v13 }
  0xfe   :  { %531 = vmatmul.mubr.msk.f32.vlgmr.msra.gmra.mxu1 %vm194_vm1, %v182_v14 }
  0xff   :  { %548 = vmatprep.mubr.msk.f32.mxu1 %vm681_vm2, %v680_v26 }
 0x1be   :  { %v532_v20 = vpop.f32.mrf.mxu1 }
 0x1bf   :  { %v273_v21 = vadd.f32 %v532_v20, %v486_v19 }
 0x1c0   :  { %v267_v22 = vpop.f32.mrf.mxu1 }
 0x1c1   :  { %v268_v23 = vadd.f32 %v486_v19, %v267_v22  ;;  %v277_v25 = vmax.f32 %v273_v21, 0.0 }
 0x1c3   :  { %v276_v24 = vmax.f32 %v268_v23, 0.0 }
 0x1c5   :  { %541 = vmatprep.mubr.msk.f32.mxu0 %vm194_vm1, %v276_v24 }
 0x1c6   :  { %542 = vmatmul.mubr.msk.f32.vlgmr.msra.gmra.mxu0 %vm194_vm1, %v277_v25 }
 0x286   :  { %v543_v30 = vpop.f32.mrf.mxu0 }
 0x287   :  { %v367_v31 = vadd.f32 %v543_v30, %v489_v29 }
 0x288   :  { %v361_v32 = vpop.f32.mrf.mxu0 }
 0x289   :  { %v371_v33 = vmax.f32 %v367_v31, 0.0  ;;  %v362_v34 = vadd.f32 %v489_v29, %v361_v32 }
 0x28b   :  { %545 = vmatpush3.xpose.msk.msra.mxu1 %vm194_vm1, %v371_v33  ;;  %v370_v35 = vmax.f32 %v362_v34, 0.0 }
 0x28c   :  { %546 = vmatprep.subr.mxu1 %v680_v26 }
 0x28f   :  { %547 = vmatpush3.xpose.msk.msra.mxu1 %vm194_vm1, %v370_v35 }
 0x292   :  { %549 = vmatmul.mubr.msk.f32.vlgmr.msra.gmra.mxu1 %vm194_vm1, %v372_v36 }
 0x352   :  { %v454_v38 = vpop.f32.mrf.mxu1 }
 0x353   :  { %v455_v39 = vadd.f32 %v454_v38, %v377_v37 }
 0x354   :  { %v550_v40 = vpop.f32.mrf.mxu1 }
 0x355   :  { %v495_v41 = vmul.f32 -1.442695, %v455_v39 }
 0x357   :  { %562 = vpow2.f32 %v495_v41 }
 0x364   :  { %v563_v42 = vpop.eup %562 }
 0x365   :  { %v461_v43 = vadd.f32 1.0, %v563_v42 }
 0x367   :  { %564 = vrcp.f32 %v461_v43 }
 0x374   :  { %v565_v44 = vpop.eup %564 }
 0x375   :  { %465 = vst.msk [vmem:[#allocation10] sm:$0xf] %vm464_vm3, %v565_v44 }
 0x376   :  { %657 = shalt.err (!%p654_p10)
}
 0x377   :  { %475 = dma.vmem_to_hbm [thread:$0]  %s473_s13, 64, %s792_s9, [#allocation4]  }
 0x378   :  { %672 = dma.done.wait [#allocation4], 64  }
 0x379   :  { %673 = vsyncadd [#allocation4], 4294967232 }
 0x37a   :  { %479 = vsyncpa [#allocation3], 1 }
 0x37b   :  { %480 = vsyncpa [#allocation6], 1 }
 0x37c   :  { %481 = vsyncpa [#allocation9], 1 }
 0x37d   :  { %482 = vsyncpa [#allocation4], 1 }

</bundles_post_ra>
